<compile_context>
chip_gen: v7x
topology: tpu7x:2x2x1
jax: 0.10.0
libtpu: 0.0.40
codegen_flags: <defaults>
</compile_context>

<pallas_src>
import functools

import jax
import jax.numpy as jnp
from jax.experimental import pallas as pl
from jax.experimental.pallas import tpu as pltpu


def _round_up(n, m):
    return -(-n // m) * m


def _sgc_kernel(x_ref, a_ref, sred_ref, st_ref, grow_ref, brow_ref, o_ref, *, eps):
    # x_ref:    (TBT, N*Cin)    rows = (b,t) slabs, lanes = (node, cin)
    # a_ref:    (N*Cin, N*Cout) fused ChebConv operator sum_k kron(T_k(L)^T, W_k)
    # sred_ref: (N*Cout, Cout)  per-channel mean-reduce matrix (entries 1/N)
    # st_ref:   (Cout, N*Cout)  per-channel broadcast matrix (entries 0/1)
    # grow_ref: (1, N*Cout)     BN gamma, node-tiled
    # brow_ref: (1, N*Cout)     BN beta, node-tiled
    # o_ref:    (TBT, N*Cout)   rows = slabs, lanes = (node, cout)

    # Entire ChebConv as ONE wide MXU matmul (no Chebyshev recurrence in-kernel).
    y = jnp.dot(x_ref[...], a_ref[...], preferred_element_type=jnp.float32)

    # BatchNorm1d (training mode) per (b, t) slab: stats over the N nodes of
    # each output channel.  Strided lane reductions / broadcasts are expressed
    # as small MXU matmuls (contraction dims N*Cout and Cout).
    mean = jnp.dot(y, sred_ref[...], preferred_element_type=jnp.float32)      # [TBT, Cout]
    d = y - jnp.dot(mean, st_ref[...], preferred_element_type=jnp.float32)
    var = jnp.dot(d * d, sred_ref[...], preferred_element_type=jnp.float32)   # biased var
    inv = jax.lax.rsqrt(var + eps)                                            # EUP slot
    inv_full = jnp.dot(inv, st_ref[...], preferred_element_type=jnp.float32)
    out = d * inv_full * grow_ref[...] + brow_ref[...]
    o_ref[...] = jnp.maximum(out, 0.0)                                        # ReLU


def spatial_graph_conv_layer(x, l_hat, weights, bias, gamma, beta,
                             eps=1e-5, block_slabs=2048):
    """x: [B, T, N, Cin], l_hat: [N, N], weights: [K, Cin, Cout]."""
    # ChebConv bias is a per-channel constant over the N nodes, so train-mode
    # BatchNorm mean subtraction cancels it exactly -> skip the dead work.
    del bias
    f32 = jnp.float32
    B, T, N, Cin = x.shape
    K, _, Cout = weights.shape
    BT = B * T
    NCi, NCo = N * Cin, N * Cout

    # Input keeps its natural (b, t, n, ci) order: pure reshape, no HBM transpose.
    xw = x.astype(f32).reshape(BT, NCi)

    # Slab tiling: slabs on the sublane axis (8-granular); lanes = N*Cin / N*Cout.
    BTp = _round_up(BT, 8)
    if BTp <= block_slabs:
        TBT = BTp                              # single block (tiny inputs)
    else:
        TBT = _round_up(block_slabs, 8)
        BTp = _round_up(BT, TBT)
    if BTp != BT:
        xw = jnp.pad(xw, ((0, BTp - BT), (0, 0)))

    # ---- one-time parameter repacking (wrapper-side, tiny) ----
    l_hat = l_hat.astype(f32)
    w = weights.astype(f32)
    tk = [jnp.eye(N, dtype=f32)]                                   # T_0
    if K > 1:
        tk.append(l_hat)                                           # T_1
    for _ in range(2, K):
        tk.append(2.0 * (l_hat @ tk[-1]) - tk[-2])                 # T_k
    # Fused operator: out_slab_flat = x_slab_flat @ A.
    a_op = sum(jnp.kron(tk[k].T, w[k]) for k in range(K))          # [N*Cin, N*Cout]

    eye_c = jnp.eye(Cout, dtype=f32)
    s_red = jnp.tile(eye_c, (N, 1)) / N                            # [N*Cout, Cout]
    s_bcast = jnp.tile(eye_c, (1, N))                              # [Cout, N*Cout]
    grow = jnp.tile(gamma.astype(f32), N)[None, :]                 # [1, N*Cout]
    brow = jnp.tile(beta.astype(f32), N)[None, :]                  # [1, N*Cout]

    kernel = functools.partial(_sgc_kernel, eps=eps)

    out = pl.pallas_call(
        kernel,
        out_shape=jax.ShapeDtypeStruct((BTp, NCo), f32),
        grid=(BTp // TBT,),
        in_specs=[
            pl.BlockSpec((TBT, NCi), lambda i: (i, 0)),            # x slab block
            pl.BlockSpec((NCi, NCo), lambda i: (0, 0)),            # fused ChebConv op
            pl.BlockSpec((NCo, Cout), lambda i: (0, 0)),           # mean-reduce matrix
            pl.BlockSpec((Cout, NCo), lambda i: (0, 0)),           # broadcast matrix
            pl.BlockSpec((1, NCo), lambda i: (0, 0)),              # bn gamma rows
            pl.BlockSpec((1, NCo), lambda i: (0, 0)),              # bn beta rows
        ],
        out_specs=pl.BlockSpec((TBT, NCo), lambda i: (i, 0)),
        compiler_params=pltpu.CompilerParams(
            dimension_semantics=("parallel",),
            vmem_limit_bytes=32 * 1024 * 1024),
    )(xw, a_op, s_red, s_bcast, grow, brow)

    return out[:BT].reshape(B, T, N, Cout)


def _reference(x, l_hat, weights, bias, gamma, beta, eps=1e-5):
    """Pure-JAX reference mirroring the PyTorch per-(b, t) loop (bias included)."""
    B, T, N, Cin = x.shape
    K, _, Cout = weights.shape
    xf = x.reshape(B * T, N, Cin)

    def one(slab):
        tx_prev = slab
        out = tx_prev @ weights[0]
        if K > 1:
            tx_cur = l_hat @ tx_prev
            out = out + tx_cur @ weights[1]
            for k in range(2, K):
                tx_next = 2.0 * (l_hat @ tx_cur) - tx_prev
                out = out + tx_next @ weights[k]
                tx_prev, tx_cur = tx_cur, tx_next
        out = out + bias[None, :]
        mean = out.mean(axis=0, keepdims=True)
        var = ((out - mean) ** 2).mean(axis=0, keepdims=True)
        y = (out - mean) / jnp.sqrt(var + eps) * gamma[None, :] + beta[None, :]
        return jnp.maximum(y, 0.0)

    return jax.vmap(one)(xf).reshape(B, T, N, Cout)


def _build_scaled_laplacian(edge_index, num_nodes, edge_weight=None):
    """Dense L_hat = -D^{-1/2} A D^{-1/2}  (PyG ChebConv, lambda_max=2, sym norm)."""
    src, dst = edge_index
    if edge_weight is None:
        edge_weight = jnp.ones(src.shape[0], dtype=jnp.float32)
    A = jnp.zeros((num_nodes, num_nodes), dtype=jnp.float32)
    # A[dst, src] so that (A @ x)[i] = sum_{j -> i} w * x[j] (source_to_target)
    A = A.at[dst, src].add(edge_weight)
    deg = A.sum(axis=1)
    dinv = jnp.where(deg > 0, 1.0 / jnp.sqrt(deg), 0.0)
    return -(dinv[:, None] * A * dinv[None, :])


# TODO(synk): nn.BatchNorm1d running_mean/running_var buffer updates are module
# state (training-time side effect) and are not produced by this forward kernel.

if __name__ == "__main__":
    B, T, N, Cin, Cout, K = 2, 8, 16, 4, 8, 3

    key = jax.random.PRNGKey(0)
    kx, kw, kb = jax.random.split(key, 3)

    x = jax.random.normal(kx, (B, T, N, Cin), dtype=jnp.float32)

    # Deterministic graph: bidirectional ring over N nodes.
    idx = jnp.arange(N)
    src = jnp.concatenate([idx, (idx + 1) % N])
    dst = jnp.concatenate([(idx + 1) % N, idx])
    edge_index = jnp.stack([src, dst], axis=0)
    l_hat = _build_scaled_laplacian(edge_index, N)

    # ChebConv parameters: K glorot-initialized [Cin, Cout] weights + bias.
    limit = jnp.sqrt(6.0 / (Cin + Cout))
    weights = jax.random.uniform(kw, (K, Cin, Cout), dtype=jnp.float32,
                                 minval=-limit, maxval=limit)
    bias = jax.random.uniform(kb, (Cout,), dtype=jnp.float32,
                              minval=-0.1, maxval=0.1)
    # BatchNorm1d parameters (PyTorch default init: weight=1, bias=0).
    gamma = jnp.ones((Cout,), dtype=jnp.float32)
    beta = jnp.zeros((Cout,), dtype=jnp.float32)

    out = spatial_graph_conv_layer(x, l_hat, weights, bias, gamma, beta)
    out = jax.block_until_ready(out)

    ref = _reference(x, l_hat, weights, bias, gamma, beta)
    assert out.shape == (B, T, N, Cout)
    assert jnp.allclose(out, ref, atol=1e-4, rtol=1e-4), "mismatch vs reference"

    print("KERNEL_OK")
</pallas_src>

<mosaic_0001>
module attributes {stable_mosaic.version = 11 : i64} {
  func.func @_sgc_kernel(%arg0: i32, %arg1: memref<16x64xf32, #tpu.memory_space<vmem>>, %arg2: memref<64x128xf32, #tpu.memory_space<vmem>>, %arg3: memref<128x8xf32, #tpu.memory_space<vmem>>, %arg4: memref<8x128xf32, #tpu.memory_space<vmem>>, %arg5: memref<1x128xf32, #tpu.memory_space<vmem>>, %arg6: memref<1x128xf32, #tpu.memory_space<vmem>>, %arg7: memref<16x128xf32, #tpu.memory_space<vmem>>) attributes {dimension_semantics = [#tpu.dimension_semantics<parallel>], iteration_bounds = array<i64: 1>, scalar_prefetch = 0 : i64, scratch_operands = 0 : i64, tpu.core_type = #tpu.core_type<tc>, window_params = [{transform_indices = @transform_0, window_bounds = array<i64: 16, 64>}, {pipeline_mode = #tpu.pipeline_mode<synchronous>, transform_indices = @transform_1, window_bounds = array<i64: 64, 128>}, {pipeline_mode = #tpu.pipeline_mode<synchronous>, transform_indices = @transform_2, window_bounds = array<i64: 128, 8>}, {pipeline_mode = #tpu.pipeline_mode<synchronous>, transform_indices = @transform_3, window_bounds = array<i64: 8, 128>}, {pipeline_mode = #tpu.pipeline_mode<synchronous>, transform_indices = @transform_4, window_bounds = array<i64: 1, 128>}, {pipeline_mode = #tpu.pipeline_mode<synchronous>, transform_indices = @transform_5, window_bounds = array<i64: 1, 128>}, {transform_indices = @transform_6, window_bounds = array<i64: 16, 128>}]} {
    %c0 = arith.constant 0 : index
    %c0_0 = arith.constant 0 : index
    %0 = vector.load %arg1[%c0, %c0_0] : memref<16x64xf32, #tpu.memory_space<vmem>>, vector<16x64xf32>
    %c0_1 = arith.constant 0 : index
    %c0_2 = arith.constant 0 : index
    %1 = vector.load %arg2[%c0_1, %c0_2] : memref<64x128xf32, #tpu.memory_space<vmem>>, vector<64x128xf32>
    %cst = arith.constant dense<0.000000e+00> : vector<16x128xf32>
    %2 = tpu.matmul %0, %1, %cst {dimension_numbers = #tpu.dot_dimension_numbers<[1], [0], [0], [1], [0, 0, 1, 1], [], []>} : vector<16x64xf32>, vector<64x128xf32>, vector<16x128xf32> -> vector<16x128xf32>
    %c0_3 = arith.constant 0 : index
    %c0_4 = arith.constant 0 : index
    %3 = vector.load %arg3[%c0_3, %c0_4] : memref<128x8xf32, #tpu.memory_space<vmem>>, vector<128x8xf32>
    %cst_5 = arith.constant dense<0.000000e+00> : vector<16x8xf32>
    %4 = tpu.matmul %2, %3, %cst_5 {dimension_numbers = #tpu.dot_dimension_numbers<[1], [0], [0], [1], [0, 0, 1, 1], [], []>} : vector<16x128xf32>, vector<128x8xf32>, vector<16x8xf32> -> vector<16x8xf32>
    %c0_6 = arith.constant 0 : index
    %c0_7 = arith.constant 0 : index
    %5 = vector.load %arg4[%c0_6, %c0_7] : memref<8x128xf32, #tpu.memory_space<vmem>>, vector<8x128xf32>
    %cst_8 = arith.constant dense<0.000000e+00> : vector<16x128xf32>
    %6 = tpu.matmul %4, %5, %cst_8 {dimension_numbers = #tpu.dot_dimension_numbers<[1], [0], [0], [1], [0, 0, 1, 1], [], []>} : vector<16x8xf32>, vector<8x128xf32>, vector<16x128xf32> -> vector<16x128xf32>
    %7 = arith.subf %2, %6 : vector<16x128xf32>
    %8 = arith.mulf %7, %7 : vector<16x128xf32>
    %c0_9 = arith.constant 0 : index
    %c0_10 = arith.constant 0 : index
    %9 = vector.load %arg3[%c0_9, %c0_10] : memref<128x8xf32, #tpu.memory_space<vmem>>, vector<128x8xf32>
    %cst_11 = arith.constant dense<0.000000e+00> : vector<16x8xf32>
    %10 = tpu.matmul %8, %9, %cst_11 {dimension_numbers = #tpu.dot_dimension_numbers<[1], [0], [0], [1], [0, 0, 1, 1], [], []>} : vector<16x128xf32>, vector<128x8xf32>, vector<16x8xf32> -> vector<16x8xf32>
    %cst_12 = arith.constant 9.99999974E-6 : f32
    %11 = vector.broadcast %cst_12 : f32 to vector<16x8xf32>
    %12 = arith.addf %10, %11 : vector<16x8xf32>
    %13 = math.rsqrt %12 : vector<16x8xf32>
    %c0_13 = arith.constant 0 : index
    %c0_14 = arith.constant 0 : index
    %14 = vector.load %arg4[%c0_13, %c0_14] : memref<8x128xf32, #tpu.memory_space<vmem>>, vector<8x128xf32>
    %cst_15 = arith.constant dense<0.000000e+00> : vector<16x128xf32>
    %15 = tpu.matmul %13, %14, %cst_15 {dimension_numbers = #tpu.dot_dimension_numbers<[1], [0], [0], [1], [0, 0, 1, 1], [], []>} : vector<16x8xf32>, vector<8x128xf32>, vector<16x128xf32> -> vector<16x128xf32>
    %16 = arith.mulf %7, %15 : vector<16x128xf32>
    %c0_16 = arith.constant 0 : index
    %c0_17 = arith.constant 0 : index
    %17 = vector.load %arg5[%c0_16, %c0_17] : memref<1x128xf32, #tpu.memory_space<vmem>>, vector<1x128xf32>
    %18 = vector.broadcast %17 : vector<1x128xf32> to vector<16x128xf32>
    %19 = arith.mulf %16, %18 : vector<16x128xf32>
    %c0_18 = arith.constant 0 : index
    %c0_19 = arith.constant 0 : index
    %20 = vector.load %arg6[%c0_18, %c0_19] : memref<1x128xf32, #tpu.memory_space<vmem>>, vector<1x128xf32>
    %21 = vector.broadcast %20 : vector<1x128xf32> to vector<16x128xf32>
    %22 = arith.addf %19, %21 : vector<16x128xf32>
    %cst_20 = arith.constant 0.000000e+00 : f32
    %23 = vector.broadcast %cst_20 : f32 to vector<16x128xf32>
    %24 = arith.maximumf %22, %23 : vector<16x128xf32>
    %c0_21 = arith.constant 0 : index
    %c0_22 = arith.constant 0 : index
    %25 = vector.load %arg7[%c0_21, %c0_22] : memref<16x128xf32, #tpu.memory_space<vmem>>, vector<16x128xf32>
    tpu.vector_store %arg7[%c0_21, %c0_22], %24 {strides = array<i32>} : memref<16x128xf32, #tpu.memory_space<vmem>>, vector<16x128xf32>,
    return
  }
  func.func @transform_0(%arg0: i32) -> (i32, i32) {
    %c0_i32 = arith.constant 0 : i32
    %c0_i32_0 = arith.constant 0 : i32
    return %arg0, %c0_i32 : i32, i32
  }
  func.func @transform_1(%arg0: i32) -> (i32, i32) {
    %c0_i32 = arith.constant 0 : i32
    %c0_i32_0 = arith.constant 0 : i32
    %c0_i32_1 = arith.constant 0 : i32
    return %c0_i32, %c0_i32_0 : i32, i32
  }
  func.func @transform_2(%arg0: i32) -> (i32, i32) {
    %c0_i32 = arith.constant 0 : i32
    %c0_i32_0 = arith.constant 0 : i32
    %c0_i32_1 = arith.constant 0 : i32
    return %c0_i32, %c0_i32_0 : i32, i32
  }
  func.func @transform_3(%arg0: i32) -> (i32, i32) {
    %c0_i32 = arith.constant 0 : i32
    %c0_i32_0 = arith.constant 0 : i32
    %c0_i32_1 = arith.constant 0 : i32
    return %c0_i32, %c0_i32_0 : i32, i32
  }
  func.func @transform_4(%arg0: i32) -> (i32, i32) {
    %c0_i32 = arith.constant 0 : i32
    %c0_i32_0 = arith.constant 0 : i32
    %c0_i32_1 = arith.constant 0 : i32
    return %c0_i32, %c0_i32_0 : i32, i32
  }
  func.func @transform_5(%arg0: i32) -> (i32, i32) {
    %c0_i32 = arith.constant 0 : i32
    %c0_i32_0 = arith.constant 0 : i32
    %c0_i32_1 = arith.constant 0 : i32
    return %c0_i32, %c0_i32_0 : i32, i32
  }
  func.func @transform_6(%arg0: i32) -> (i32, i32) {
    %c0_i32 = arith.constant 0 : i32
    %c0_i32_0 = arith.constant 0 : i32
    return %arg0, %c0_i32 : i32, i32
  }
}

</mosaic_0001>

<bundles_post_ra>
// kernel: tpu_custom_call.1
= control target key start
LH: loop header
LB: loop body
LE: loop exit
PB: predicated region body
PF: predicated region fallthrough
CT: control target
= control target key end

     0   :  { %vm34_vm0 = vcmask 523264   ;;  %s905_s0 = inlined_call_operand.vmem [shape: f32[16,64], index: 0, kind: input, shape index: {}]   ;;  %s906_s1 = inlined_call_operand.vmem [shape: f32[64,128], index: 1, kind: input, shape index: {}]   ;;  %s907_s2 = inlined_call_operand.vmem [shape: f32[128,8], index: 2, kind: input, shape index: {}]   ;;  %s908_s3 = inlined_call_operand.vmem [shape: f32[8,128], index: 3, kind: input, shape index: {}]   ;;  %s909_s4 = inlined_call_operand.vmem [shape: f32[1,128], index: 4, kind: input, shape index: {}]   ;;  %s910_s5 = inlined_call_operand.vmem [shape: f32[1,128], index: 5, kind: input, shape index: {}]   ;;  %s911_s6 = inlined_call_operand.hbm [shape: f32[16,128], index: 6, kind: output, shape index: {}]  }
   0x1   :  { %v26_v0 = vld [vmem:[%s906_s1] sm:$0xff]  ;;  %v27_v1 = vld [vmem:[%s906_s1 + $0x8] sm:$0xff]  ;;  %v28_v2 = vld [vmem:[%s906_s1 + $0x10] sm:$0xff] }
   0x2   :  { %v651_v3 = vpack.c.bf16 %v27_v1, %v26_v0  ;;  %v29_v4 = vld [vmem:[%s906_s1 + $0x18] sm:$0xff]  ;;  %v30_v6 = vld [vmem:[%s906_s1 + $0x20] sm:$0xff]  ;;  %v31_v7 = vld [vmem:[%s906_s1 + $0x28] sm:$0xff] }
   0x3   :  { %v655_v5 = vpack.c.bf16 %v29_v4, %v28_v2  ;;  %v24_v8 = vld [vmem:[%s905_s0] sm:$0xff]  ;;  %v117_v10 = vld [vmem:[%s907_s2 + $0x8] sm:$0xff]  ;;  %v118_v12 = vld [vmem:[%s907_s2 + $0x10] sm:$0xff]  ;;  %v659_v14 = vpack.c.bf16 %v31_v7, %v30_v6 }
   0x4   :  { %652 = vmatprep.subr.bf16.mxu0 %v651_v3  ;;  %568 = vmatprep.mubr.msk.f32.mxu0 %vm34_vm0, %v24_v8  ;;  %v116_v9 = vld [vmem:[%s907_s2] sm:$0xff]  ;;  %v119_v13 = vld [vmem:[%s907_s2 + $0x18] sm:$0xff]  ;;  %v121_v17 = vld [vmem:[%s907_s2 + $0x28] sm:$0xff] }
   0x5   :  { %654 = vmatpush3.bf16.msra.mxu0 %v651_v3  ;;  %v667_v11 = vpack.c.bf16 %v117_v10, %v116_v9  ;;  %v671_v15 = vpack.c.bf16 %v119_v13, %v118_v12  ;;  %v120_v16 = vld [vmem:[%s907_s2 + $0x20] sm:$0xff]  ;;  %v32_v18 = vld [vmem:[%s906_s1 + $0x30] sm:$0xff]  ;;  %v33_v19 = vld [vmem:[%s906_s1 + $0x38] sm:$0xff] }
   0x6   :  { %656 = vmatprep.subr.bf16.mxu0 %v655_v5  ;;  %v675_v20 = vpack.c.bf16 %v121_v17, %v120_v16 }
   0x7   :  { %668 = vmatprep.subr.bf16.mxu1 %v667_v11 }
   0x8   :  { %670 = vmatpush3.bf16.msra.mxu1 %v667_v11 }
   0x9   :  { %658 = vmatpush3.bf16.msra.mxu0 %v655_v5  ;;  %672 = vmatprep.subr.bf16.mxu1 %v671_v15 }
   0xa   :  { %11 = vsyncpa [#allocation3], 0  ;;  %660 = vmatprep.subr.bf16.mxu0 %v659_v14  ;;  %v663_v21 = vpack.c.bf16 %v33_v19, %v32_v18  ;;  %v122_v22 = vld [vmem:[%s907_s2 + $0x30] sm:$0xff]  ;;  %v123_v23 = vld [vmem:[%s907_s2 + $0x38] sm:$0xff]  ;;  %vm208_vm1 = vcmask 64512   ;;  %s762_s27 = smov [#allocation2]  }
   0xb   :  { %v679_v24 = vpack.c.bf16 %v123_v23, %v122_v22  ;;  %v124_v25 = vld [vmem:[%s907_s2 + $0x40] sm:$0xff]  ;;  %v125_v26 = vld [vmem:[%s907_s2 + $0x48] sm:$0xff]  ;;  %v126_v29 = vld [vmem:[%s907_s2 + $0x50] sm:$0xff]  ;;  %s481_s28 = sshll.u32 %s762_s27, 4  ;;  %s482_s28 = int_to_ptr.vmem [resolvable:$true] %s481_s28 }
   0xc   :  { %674 = vmatpush3.bf16.msra.mxu1 %v671_v15  ;;  %v25_v27 = vld [vmem:[%s905_s0 + $0x8] sm:$0xff]  ;;  %v683_v28 = vpack.c.bf16 %v125_v26, %v124_v25  ;;  %v127_v30 = vld [vmem:[%s907_s2 + $0x58] sm:$0xff]  ;;  %v128_v32 = vld [vmem:[%s907_s2 + $0x60] sm:$0xff]  ;;  %s738_s29 = scalar_lea.vmem %s482_s28, 256  ;;  %p743_p1 = scmp.lt.s32.totalorder %s482_s28, %s482_s28 }
   0xd   :  { %662 = vmatpush3.bf16.msra.mxu0 %v659_v14  ;;  %676 = vmatprep.subr.bf16.mxu1 %v675_v20  ;;  %v687_v31 = vpack.c.bf16 %v127_v30, %v126_v29  ;;  %v129_v33 = vld [vmem:[%s907_s2 + $0x68] sm:$0xff]  ;;  %v130_v35 = vld [vmem:[%s907_s2 + $0x70] sm:$0xff]  ;;  %v131_v36 = vld [vmem:[%s907_s2 + $0x78] sm:$0xff]  ;;  %p739_p0 = scmp.ne.s32.totalorder %s482_s28, %s738_s29  ;;  %p744_p2 = scmp.lt.s32.totalorder %s738_s29, %s738_s29 }
   0xe   :  { %664 = vmatprep.subr.bf16.mxu0 %v663_v21  ;;  %v691_v34 = vpack.c.bf16 %v129_v33, %v128_v32  ;;  %v695_v37 = vpack.c.bf16 %v131_v36, %v130_v35  ;;  %v207_v38 = vld [vmem:[%s908_s3] sm:$0xff] }
   0xf   :  { %v498_v56 = vld [vmem:[%s909_s4] ss:$0 sm:$0xff]  ;;  %p745_p3 = por %p744_p2, %p743_p1 }
  0x10   :  { %678 = vmatpush3.bf16.msra.mxu1 %v675_v20  ;;  %v499_v59 = vld [vmem:[%s910_s5] ss:$0 sm:$0xff] }
  0x11   :  { %666 = vmatpush3.bf16.msra.mxu0 %v663_v21  ;;  %680 = vmatprep.subr.bf16.mxu1 %v679_v24  ;;  %p746_p4 = pnand %p745_p3, %p739_p0 }
  0x12   :  { %700 = vmatprep.subr.bf16.mxu0 %v667_v11 }
  0x14   :  { %569 = vmatmul.mubr.msk.f32.vlgmr.msra.gmra.mrb[0].mxu0 %vm34_vm0, %v25_v27  ;;  %682 = vmatpush3.bf16.msra.mxu1 %v679_v24 }
  0x15   :  { %684 = vmatprep.subr.bf16.mxu1 %v683_v28  ;;  %702 = vmatpush3.bf16.msra.mxu0 %v667_v11 }
  0x16   :  { %704 = vmatprep.subr.bf16.mxu0 %v671_v15 }
  0x18   :  { %686 = vmatpush3.bf16.msra.mxu1 %v683_v28 }
  0x19   :  { %688 = vmatprep.subr.bf16.mxu1 %v687_v31  ;;  %706 = vmatpush3.bf16.msra.mxu0 %v671_v15 }
  0x1a   :  { %708 = vmatprep.subr.bf16.mxu0 %v675_v20 }
  0x1c   :  { %690 = vmatpush3.bf16.msra.mxu1 %v687_v31 }
  0x1d   :  { %692 = vmatprep.subr.bf16.mxu1 %v691_v34  ;;  %710 = vmatpush3.bf16.msra.mxu0 %v675_v20 }
  0x1e   :  { %712 = vmatprep.subr.bf16.mxu0 %v679_v24 }
  0x20   :  { %694 = vmatpush3.bf16.msra.mxu1 %v691_v34 }
  0x21   :  { %696 = vmatprep.subr.bf16.mxu1 %v695_v37  ;;  %714 = vmatpush3.bf16.msra.mxu0 %v679_v24 }
  0x22   :  { %716 = vmatprep.subr.bf16.mxu0 %v683_v28 }
  0x24   :  { %698 = vmatpush3.bf16.msra.mxu1 %v695_v37 }
  0x25   :  { %718 = vmatpush3.bf16.msra.mxu0 %v683_v28  ;;  %606 = vmatprep.subr.mxu1 %v207_v38 }
  0x26   :  { %720 = vmatprep.subr.bf16.mxu0 %v687_v31 }
  0x29   :  { %722 = vmatpush3.bf16.msra.mxu0 %v687_v31 }
  0x2a   :  { %724 = vmatprep.subr.bf16.mxu0 %v691_v34 }
  0x2d   :  { %726 = vmatpush3.bf16.msra.mxu0 %v691_v34 }
  0x2e   :  { %728 = vmatprep.subr.bf16.mxu0 %v695_v37 }
  0x31   :  { %730 = vmatpush3.bf16.msra.mxu0 %v695_v37 }
  0xe7   :  { %v570_v39 = vpop.f32.mrb[0].mxu0 }
  0xe8   :  { %v107_v40 = vpop.f32.mrb[1].mxu0 }
  0xe9   :  { %603 = vmatprep.mubr.f32.mxu1 %v107_v40 }
  0xea   :  { %604 = vmatmul.mubr.f32.vlgmr.msra.gmra.mrb[0].mxu1 %v570_v39 }
  0xeb   :  { %607 = vmatpush3.msra.mxu1 %v207_v38 }
  0xec   :  { %646 = vmatprep.subr.mxu1 %v207_v38 }
 0x1bd   :  { %v605_v41 = vpop.f32.mrb[0].mxu1 }
 0x1be   :  { %v198_v42 = vpop.f32.mrb[1].mxu1 }
 0x1bf   :  { %608 = vmatprep.mubr.msk.f32.mxu1 %vm208_vm1, %v198_v42 }
 0x1c0   :  { %609 = vmatmul.mubr.msk.f32.vlgmr.msra.gmra.mrb[2].mxu1 %vm208_vm1, %v605_v41 }
 0x1c1   :  { %647 = vmatpush3.msra.mxu1 %v207_v38 }
 0x293   :  { %v610_v43 = vpop.f32.mrb[2].mxu1 }
 0x294   :  { %v291_v44 = vsub.f32 %v570_v39, %v610_v43  ;;  %v281_v45 = vpop.f32.mrb[3].mxu1 }
 0x295   :  { %v290_v46 = vsub.f32 %v107_v40, %v281_v45 }
 0x296   :  { %v293_v48 = vmul.f32 %v291_v44, %v291_v44 }
 0x297   :  { %v292_v47 = vmul.f32 %v290_v46, %v290_v46 }
 0x299   :  { %643 = vmatprep.mubr.f32.mxu0 %v292_v47 }
 0x29a   :  { %644 = vmatmul.mubr.f32.vlgmr.msra.gmra.mrb[2].mxu0 %v293_v48 }
 0x36d   :  { %v645_v49 = vpop.f32.mrb[2].mxu0 }
 0x36e   :  { %v366_v50 = vadd.f32 1e-05, %v645_v49  ;;  %v360_v51 = vpop.f32.mrb[3].mxu0 }
 0x36f   :  { %v361_v52 = vadd.f32 1e-05, %v360_v51 }
 0x371   :  { %734 = vrsqrt.f32 %v361_v52 }
 0x372   :  { %736 = vrsqrt.f32 %v366_v50 }
 0x37b   :  { %v735_v53 = vpop.eup %734 }
 0x37c   :  { %v737_v54 = vpop.eup %736  ;;  %648 = vmatprep.mubr.msk.f32.mxu1 %vm208_vm1, %v735_v53 }
 0x37d   :  { %649 = vmatmul.mubr.msk.f32.vlgmr.msra.gmra.mrb[4].mxu1 %vm208_vm1, %v737_v54 }
 0x450   :  { %v650_v55 = vpop.f32.mrb[4].mxu1 }
 0x451   :  { %v453_v57 = vmul.f32 %v650_v55, %v291_v44  ;;  %v443_v58 = vpop.f32.mrb[5].mxu1 }
 0x452   :  { %v452_v60 = vmul.f32 %v443_v58, %v290_v46 }
 0x453   :  { %v462_v61 = vmul.f32 %v498_v56, %v453_v57 }
 0x454   :  { %v461_v62 = vmul.f32 %v498_v56, %v452_v60 }
 0x455   :  { %v471_v63 = vadd.f32 %v499_v59, %v462_v61 }
 0x456   :  { %v470_v0 = vadd.f32 %v499_v59, %v461_v62 }
 0x457   :  { %v473_v1 = vmax.f32 %v471_v63, 0.0 }
 0x458   :  { %v472_v2 = vmax.f32 %v470_v0, 0.0 }
 0x459   :  { %475 = vst [vmem:[#allocation2 + $0x8] sm:$0xff] %v473_v1 }
 0x45a   :  { %474 = vst [vmem:[#allocation2] sm:$0xff] %v472_v2 }
 0x45b   :  { %749 = shalt.err (!%p746_p4)
}
 0x45c   :  { %s750_s30 = scalar_lea.hbm %s911_s6, 256 }
 0x45d   :  { %p751_p5 = scmp.ne.s32.totalorder %s911_s6, %s750_s30  ;;  %p754_p6 = scmp.lt.u32.totalorder %s750_s30, %s911_s6 }
 0x45f   :  { %p756_p7 = pnand %p754_p6, %p751_p5 }
 0x461   :  { %759 = shalt.err (!%p756_p7)
}
 0x462   :  { %s763_s10 = smov 128   ;;  %s764_s11 = smov 8  }
 0x463   :  { %487 = dma.vmem_to_hbm [thread:$0]  %s482_s28, 256, %s911_s6, [#allocation3], %s763_s10, %s763_s10, %s764_s11  }
 0x464   :  { %760 = dma.done.wait [#allocation3], 256  }
 0x465   :  { %761 = vsyncadd [#allocation3], 4294967040 }
 0x466   :  { %491 = vsyncpa [#allocation3], 1 }

</bundles_post_ra>
